<compile_context>
chip_gen: v6e
topology: v6e:2x2x1
jax: 0.10.0
libtpu: 0.0.40
codegen_flags: <defaults>
</compile_context>

<pallas_src>
import functools
import math

import jax
import jax.numpy as jnp
from jax.experimental import pallas as pl
from jax.experimental.pallas import tpu as pltpu


# ----------------------------------------------------------------------------
# Pallas kernel: masked select between x[b] and x[perm[b]] along the cut axis
# ----------------------------------------------------------------------------
def _cutmix_kernel(perm_ref, cut_ref, x_ref, xp_ref, o_ref, *,
                   lane, w, h, axis_is_last):
    del perm_ref                       # only consumed by the index_maps
    cut = cut_ref[0]                   # SMEM scalar: cutoff along the cut axis
    shp = o_ref.shape                  # (1, rows, lane)
    row = jax.lax.broadcasted_iota(jnp.int32, shp, len(shp) - 2)
    col = jax.lax.broadcasted_iota(jnp.int32, shp, len(shp) - 1)
    # Position of each flattened element along the cut axis.
    if axis_is_last:
        if lane % w == 0:
            pos = col % w              # row*lane is a multiple of w
        else:
            pos = (row * lane + col) % w
    else:
        if lane == w:
            pos = row % h              # col // w == 0
        else:
            pos = ((row * lane + col) // w) % h
    o_ref[...] = jnp.where(pos < cut, xp_ref[...], x_ref[...])


def cutmix_select(x, perm, cutoff, axis_is_last):
    """out[b] = where(pos_along_cut_axis < cutoff, x[perm[b]], x[b])."""
    assert x.ndim >= 3, "expect (B, ..., H, W)-like tensors"
    B = x.shape[0]
    W = x.shape[-1]
    H = x.shape[-2]
    total = math.prod(x.shape[1:])
    # Lane-dense layout when possible: flatten each sample to (rows, 128).
    lane = 128 if total % 128 == 0 else W
    rows = total // lane
    x3 = x.reshape(B, rows, lane)

    kernel = functools.partial(_cutmix_kernel, lane=lane, w=W, h=H,
                               axis_is_last=bool(axis_is_last))
    out = pl.pallas_call(
        kernel,
        out_shape=jax.ShapeDtypeStruct((B, rows, lane), x.dtype),
        grid_spec=pltpu.PrefetchScalarGridSpec(
            num_scalar_prefetch=2,
            grid=(B,),
            in_specs=[
                # original sample b
                pl.BlockSpec((1, rows, lane),
                             lambda b, perm, cut: (b, 0, 0)),
                # permuted sample perm[b], gathered straight from the same
                # HBM array via the scalar-prefetched permutation
                pl.BlockSpec((1, rows, lane),
                             lambda b, perm, cut: (perm[b], 0, 0)),
            ],
            out_specs=pl.BlockSpec((1, rows, lane),
                                   lambda b, perm, cut: (b, 0, 0)),
        ),
        compiler_params=pltpu.CompilerParams(
            dimension_semantics=("parallel",)),
    )(jnp.asarray(perm, jnp.int32),
      jnp.asarray([cutoff], jnp.int32),
      x3, x3)
    return out.reshape(x.shape)


# ----------------------------------------------------------------------------
# Module wrapper (mirrors the PyTorch CutmixSimple module)
# ----------------------------------------------------------------------------
class CutmixSimple:
    """JAX/Pallas port of CutmixSimple (forward only)."""

    def __init__(self, cut_beta: float = 5.0, cut_dims: tuple = (-2, -1)):
        assert all(d < 0 for d in cut_dims), 'dims must be negatively indexed.'
        self.cut_beta = cut_beta
        self.dims = cut_dims
        self.last_sample = None   # record of the host-side random draw

    def forward(self, key, X, Y, Z=None):
        # Host-side randomness, mirroring Beta.sample().item(),
        # torch.randperm and random.choice in the reference module.
        kb, kp, ka = jax.random.split(key, 3)
        cut_idx = float(jax.random.beta(kb, self.cut_beta, self.cut_beta))
        perm = jax.random.permutation(kp, X.shape[0]).astype(jnp.int32)
        axis = self.dims[int(jax.random.randint(ka, (), 0, len(self.dims)))]
        if axis not in (-1, -2):
            raise ValueError('CutmixSimple: Axis not implemented.')
        cutoff_X = int(cut_idx * X.shape[axis])
        cutoff_Y = int(cut_idx * Y.shape[axis])
        self.last_sample = dict(cut_idx=cut_idx, perm=perm, axis=axis,
                                cutoff_X=cutoff_X, cutoff_Y=cutoff_Y)
        axis_is_last = (axis == -1)
        # TODO(synk): PyTorch mutates X/Y in place; JAX returns new arrays.
        Xo = cutmix_select(X, perm, cutoff_X, axis_is_last)
        Yo = cutmix_select(Y, perm, cutoff_Y, axis_is_last)
        return Xo, Yo

    __call__ = forward


# ----------------------------------------------------------------------------
# Pure-JAX reference for verification
# ----------------------------------------------------------------------------
def _cutmix_ref(a, perm, cutoff, axis):
    ap = a[perm]
    if axis == -1:
        mask = jnp.arange(a.shape[-1]) < cutoff
    else:
        mask = (jnp.arange(a.shape[-2]) < cutoff)[:, None]
    return jnp.where(mask, ap, a)


if __name__ == "__main__":
    key = jax.random.PRNGKey(0)
    kx, ky, kaug = jax.random.split(key, 3)

    B = 4
    X = jax.random.normal(kx, (B, 3, 16, 16), jnp.float32)
    Y = (jax.random.uniform(ky, (B, 5, 16, 16)) > 0.5).astype(jnp.float32)

    cutmix = CutmixSimple(cut_beta=5.0, cut_dims=(-2, -1))
    Xo, Yo = cutmix(kaug, X, Y)
    jax.block_until_ready(Xo)
    jax.block_until_ready(Yo)

    s = cutmix.last_sample
    Xr = _cutmix_ref(X, s['perm'], s['cutoff_X'], s['axis'])
    Yr = _cutmix_ref(Y, s['perm'], s['cutoff_Y'], s['axis'])
    assert Xo.shape == X.shape and Yo.shape == Y.shape
    assert jnp.array_equal(Xo, Xr), "X mismatch vs reference"
    assert jnp.array_equal(Yo, Yr), "Y mismatch vs reference"

    # Exercise both axis variants of the kernel explicitly.
    for ax in (-1, -2):
        cut = X.shape[ax] // 2
        got = cutmix_select(X, s['perm'], cut, ax == -1)
        ref = _cutmix_ref(X, s['perm'], cut, ax)
        assert jnp.array_equal(got, ref), f"axis {ax} mismatch vs reference"

    print("KERNEL_OK")
</pallas_src>

<mosaic_0001>
module attributes {stable_mosaic.version = 11 : i64} {
  func.func @_cutmix_kernel(%arg0: i32, %arg1: memref<4xi32, #tpu.memory_space<smem>>, %arg2: memref<1xi32, #tpu.memory_space<smem>>, %arg3: memref<1x6x128xf32, #tpu.memory_space<vmem>>, %arg4: memref<1x6x128xf32, #tpu.memory_space<vmem>>, %arg5: memref<1x6x128xf32, #tpu.memory_space<vmem>>) attributes {dimension_semantics = [#tpu.dimension_semantics<parallel>], iteration_bounds = array<i64: 4>, scalar_prefetch = 2 : i64, scratch_operands = 0 : i64, tpu.core_type = #tpu.core_type<tc>, window_params = [{transform_indices = @transform_0, window_bounds = array<i64: 1, 6, 128>}, {transform_indices = @transform_1, window_bounds = array<i64: 1, 6, 128>}, {transform_indices = @transform_2, window_bounds = array<i64: 1, 6, 128>}]} {
    %c0 = arith.constant 0 : index
    %0 = memref.load %arg2[%c0] : memref<1xi32, #tpu.memory_space<smem>>
    %1 = tpu.iota {dimensions = array<i32: 2>} : vector<1x6x128xi32>
    %c16_i32 = arith.constant 16 : i32
    %c0_i32 = arith.constant 0 : i32
    %2 = arith.cmpi eq, %c16_i32, %c0_i32 : i32
    %c1_i32 = arith.constant 1 : i32
    %3 = arith.select %2, %c1_i32, %c16_i32 : i32
    %4 = vector.broadcast %3 : i32 to vector<1x6x128xi32>
    %5 = arith.remsi %1, %4 : vector<1x6x128xi32>
    %c0_i32_0 = arith.constant 0 : i32
    %6 = vector.broadcast %c0_i32_0 : i32 to vector<1x6x128xi32>
    %7 = arith.cmpi ne, %5, %6 : vector<1x6x128xi32>
    %c0_i32_1 = arith.constant 0 : i32
    %8 = vector.broadcast %c0_i32_1 : i32 to vector<1x6x128xi32>
    %9 = arith.cmpi slt, %5, %8 : vector<1x6x128xi32>
    %c0_i32_2 = arith.constant 0 : i32
    %10 = arith.cmpi slt, %3, %c0_i32_2 : i32
    %11 = vector.broadcast %10 : i1 to vector<1x6x128xi1>
    %12 = vector.broadcast %11 : vector<1x6x128xi1> to vector<1x6x128xi1>
    %13 = arith.xori %9, %12 : vector<1x6x128xi1>
    %14 = arith.andi %13, %7 : vector<1x6x128xi1>
    %15 = vector.broadcast %3 : i32 to vector<1x6x128xi32>
    %16 = arith.addi %5, %15 : vector<1x6x128xi32>
    %17 = arith.select %14, %16, %5 : vector<1x6x128xi1>, vector<1x6x128xi32>
    %18 = vector.broadcast %0 : i32 to vector<1x6x128xi32>
    %19 = arith.cmpi slt, %17, %18 : vector<1x6x128xi32>
    %c0_3 = arith.constant 0 : index
    %c0_4 = arith.constant 0 : index
    %c0_5 = arith.constant 0 : index
    %20 = vector.load %arg4[%c0_3, %c0_4, %c0_5] : memref<1x6x128xf32, #tpu.memory_space<vmem>>, vector<1x6x128xf32>
    %c0_6 = arith.constant 0 : index
    %c0_7 = arith.constant 0 : index
    %c0_8 = arith.constant 0 : index
    %21 = vector.load %arg3[%c0_6, %c0_7, %c0_8] : memref<1x6x128xf32, #tpu.memory_space<vmem>>, vector<1x6x128xf32>
    %22 = arith.select %19, %20, %21 : vector<1x6x128xi1>, vector<1x6x128xf32>
    %c0_9 = arith.constant 0 : index
    %c0_10 = arith.constant 0 : index
    %c0_11 = arith.constant 0 : index
    %23 = vector.load %arg5[%c0_9, %c0_10, %c0_11] : memref<1x6x128xf32, #tpu.memory_space<vmem>>, vector<1x6x128xf32>
    tpu.vector_store %arg5[%c0_9, %c0_10, %c0_11], %22 {strides = array<i32>} : memref<1x6x128xf32, #tpu.memory_space<vmem>>, vector<1x6x128xf32>,
    return
  }
  func.func @transform_0(%arg0: i32, %arg1: memref<4xi32, #tpu.memory_space<smem>>, %arg2: memref<1xi32, #tpu.memory_space<smem>>) -> (i32, i32, i32) {
    %c0_i32 = arith.constant 0 : i32
    %c0_i32_0 = arith.constant 0 : i32
    %c0_i32_1 = arith.constant 0 : i32
    return %arg0, %c0_i32, %c0_i32_0 : i32, i32, i32
  }
  func.func @transform_1(%arg0: i32, %arg1: memref<4xi32, #tpu.memory_space<smem>>, %arg2: memref<1xi32, #tpu.memory_space<smem>>) -> (i32, i32, i32) {
    %0 = arith.index_cast %arg0 : i32 to index
    %1 = memref.load %arg1[%0] : memref<4xi32, #tpu.memory_space<smem>>
    %c0_i32 = arith.constant 0 : i32
    %c0_i32_0 = arith.constant 0 : i32
    %c0_i32_1 = arith.constant 0 : i32
    return %1, %c0_i32, %c0_i32_0 : i32, i32, i32
  }
  func.func @transform_2(%arg0: i32, %arg1: memref<4xi32, #tpu.memory_space<smem>>, %arg2: memref<1xi32, #tpu.memory_space<smem>>) -> (i32, i32, i32) {
    %c0_i32 = arith.constant 0 : i32
    %c0_i32_0 = arith.constant 0 : i32
    %c0_i32_1 = arith.constant 0 : i32
    return %arg0, %c0_i32, %c0_i32_0 : i32, i32, i32
  }
}

</mosaic_0001>

<bundles_post_ra>
// kernel: tpu_custom_call.1
= control target key start
LH: loop header
LB: loop body
LE: loop exit
PB: predicated region body
PF: predicated region fallthrough
CT: control target
= control target key end

     0   :  { %s351_s0 = inlined_call_operand.vmem [shape: s32[4], index: 0, kind: input, shape index: {}]   ;;  %s352_s1 = inlined_call_operand.<no memory space> [shape: s32[1], index: 1, kind: input, shape index: {}]   ;;  %s353_s2 = inlined_call_operand.vmem [shape: f32[4,6,128], index: 2, kind: input, shape index: {}]   ;;  %s354_s3 = inlined_call_operand.vmem [shape: f32[4,6,128], index: 3, kind: input, shape index: {}]   ;;  %s355_s4 = inlined_call_operand.vmem [shape: f32[4,6,128], index: 4, kind: output, shape index: {}]  }
   0x1   :  { %s9_s17 = sshll.u32 %s351_s0, 4  ;;  %13 = sst [smem:[#allocation4]] %s352_s1  ;;  %s10_s17 = int_to_ptr.vmem [resolvable:$true] %s9_s17 }
   0x2   :  { %s277_s20 = scalar_lea.vmem %s10_s17, 16  ;;  %p282_p1 = scmp.lt.s32.totalorder %s10_s17, %s10_s17 }
   0x3   :  { %p278_p0 = scmp.ne.s32.totalorder %s10_s17, %s277_s20  ;;  %p283_p2 = scmp.lt.s32.totalorder %s277_s20, %s277_s20 }
   0x5   :  { %p284_p3 = por %p283_p2, %p282_p1 }
   0x7   :  { %p285_p4 = pnand %p284_p3, %p278_p0 }
   0x9   :  { %288 = shalt.err (!%p285_p4)  }
   0xa   :  { %s299_s21 = smov [#allocation3]  }
   0xb   :  { %12 = dma.vmem_to_smem %s10_s17, 16, %s299_s21, [#allocation2] }
   0xc   :  { %293 = dma.done.wait [#allocation2], 16 }
   0xd   :  { %294 = vsyncadd [#allocation2], 4294967280 }
   0xe   :  { %15 = sfence }
   0xf   :  { %s331_s22 = smov 0  }
  0x10 LB: > { %s258_s0 = sadd.s32 4294967295, %s297_s22   ;;  %p262_p5 = scmp.ge.s32.totalorder %s297_s22, 1  ;;  %s297_s22 = sphi %s331_s22, %s21_s22  }
  0x11   : > { %p133_p6 = scmp.lt.s32.totalorder %s297_s22, 5 }
  0x13   : > { %p134_p7 = pnand %p262_p5, %p133_p6 }
  0x14   : > { %p158_p8 = scmp.lt.s32.totalorder (!%p134_p7), %s258_s0, 3  ;;  %s162_s1 = sld [smem:[#allocation3 + %s258_s0]] (!%p134_p7) }
  0x15   : > { %137 = sbr.rel (%p134_p7) target bundleno = 35 (0x23), region = 28  ;;  %s172_s23 = sld [smem:[#allocation4]] (!%p134_p7) }
  0x1a   : > { %v173_v0 = vlaneseq  ;;  %s357_s0 = smov (!%p158_p8, %s258_s0), 3  ;;  %p163_p9 = scmp.lt.s32.totalorder %s162_s1, 3 }
  0x1b   : > { %s263_s24 = sshll.u32 %s357_s0, 3  ;;  %v187_v3 = vstv %s172_s23 }
  0x1c   : > { %v174_v1 = vand.u32 127, %v173_v0  ;;  %s161_s27 = scalar_lea.vmem %s353_s2, %s263_s24  ;;  %s359_s1 = smov (!%p163_p9, %s162_s1), 3 }
  0x1d   : > { %s264_s28 = sshll.u32 %s359_s1, 3  ;;  %v190_v4 = vld [vmem:[%s161_s27] sm:$0x3f]  ;;  %s171_s8 = scalar_lea.vmem %s355_s4, %s263_s24 }
  0x1e   : > { %v179_v2 = vand.u32 15, %v174_v1  ;;  %s166_s5 = scalar_lea.vmem %s354_s3, %s264_s28 }
  0x1f   : > { %v189_v5 = vld [vmem:[%s166_s5] sm:$0x3f] }
  0x20   : > { %vm188_vm0 = vcmp.lt.s32.totalorder %v179_v2, %v187_v3 }
  0x21   : > { %v191_v6 = vsel %vm188_vm0, %v189_v5, %v190_v4 }
  0x22   : > { %192 = vst [vmem:[%s171_s8] sm:$0x3f] %v191_v6 }
  0x23 PF: > { %s21_s22 = sadd.s32 1, %s297_s22  }
  0x24   : > { %p18_p10 = scmp.ge.s32.totalorder %s21_s22, 6  }
  0x26   :  { %20 = sbr.rel (!%p18_p10) target bundleno = 16 (0x10), region = 61 }

</bundles_post_ra>
